<compile_context>
chip_gen: v7x
topology: tpu7x:2x2x1
jax: 0.10.0
libtpu: 0.0.40
codegen_flags: <defaults>
</compile_context>

<pallas_src>
import functools

import jax
import jax.numpy as jnp
from jax.experimental import pallas as pl
from jax.experimental.pallas import tpu as pltpu


def _iw_msl_kernel(x_ref, cnt_ref, ssq_ref, cnt_acc, ssq_acc, *, ignore_value):
    # x_ref:   (1, C, T) tile of probabilities for one image.
    # cnt_ref: (1, C, 1) per-class valid-pixel count for this image (written last step).
    # ssq_ref: (1, C, 1) per-class sum of sum_{c'} prob^2 (written last step).
    # cnt_acc/ssq_acc: (C, T) f32 VMEM accumulators, resident across the spatial axis.
    s_idx = pl.program_id(1)

    @pl.when(s_idx == 0)
    def _init():
        cnt_acc[...] = jnp.zeros_like(cnt_acc)
        ssq_acc[...] = jnp.zeros_like(ssq_acc)

    x = x_ref[0].astype(jnp.float32)                           # (C, T)
    C = x.shape[0]

    maxpred = jnp.max(x, axis=0, keepdims=True)                # (1, T)
    ci = jax.lax.broadcasted_iota(jnp.int32, x.shape, 0)       # (C, T) channel ids
    # First-max tie-break, same as torch.max(dim=1).
    argpred = jnp.min(jnp.where(x == maxpred, ci, C), axis=0, keepdims=True)  # (1, T)
    valid = maxpred != ignore_value                            # (1, T) == mask_arg
    sel = jnp.where((ci == argpred) & valid, 1.0, 0.0)         # (C, T) one-hot * mask
    ssq = jnp.sum(x * x, axis=0, keepdims=True)                # (1, T) sum_c prob^2

    # Pure VPU adds in the steady-state loop.
    cnt_acc[...] += sel
    ssq_acc[...] += sel * ssq

    @pl.when(s_idx == pl.num_programs(1) - 1)
    def _finalize():
        cnt_ref[0] = jnp.sum(cnt_acc[...], axis=1, keepdims=True)   # (C, 1)
        ssq_ref[0] = jnp.sum(ssq_acc[...], axis=1, keepdims=True)   # (C, 1)


def _pick_spatial_tile(S, cap=4096):
    t = cap
    while t >= 128:
        if S % t == 0:
            return t
        t //= 2
    return S  # small / odd spatial extents: one full-width block


def iw_maxsquare_loss(prob, *, ignore_index=-1, num_class=None, ratio=0.2, label=None):
    """Image-weighted max-square loss. prob: (N, C, H, W) class probabilities."""
    # TODO(synk): the `label is not None` path (external pseudo-labels drive the
    # histogram while the gather stays on argpred) is not implemented here.
    if label is not None:
        raise NotImplementedError("label != None path not implemented")

    N, C, H, W = prob.shape
    if num_class is None:
        num_class = C
    S = H * W
    T = _pick_spatial_tile(S)
    x = prob.reshape(N, C, S)

    kernel = functools.partial(_iw_msl_kernel, ignore_value=float(ignore_index))
    cnt3, ssq3 = pl.pallas_call(
        kernel,
        out_shape=(jax.ShapeDtypeStruct((N, C, 1), jnp.float32),
                   jax.ShapeDtypeStruct((N, C, 1), jnp.float32)),
        grid_spec=pltpu.PrefetchScalarGridSpec(
            num_scalar_prefetch=0,
            grid=(N, S // T),
            in_specs=[pl.BlockSpec((1, C, T), lambda n, s: (n, 0, s))],
            out_specs=(pl.BlockSpec((1, C, 1), lambda n, s: (n, 0, 0)),
                       pl.BlockSpec((1, C, 1), lambda n, s: (n, 0, 0))),
            scratch_shapes=[pltpu.VMEM((C, T), jnp.float32),
                            pltpu.VMEM((C, T), jnp.float32)],
        ),
        compiler_params=pltpu.CompilerParams(
            dimension_semantics=("parallel", "arbitrary"),
            vmem_limit_bytes=32 * 1024 * 1024,
        ),
    )(x)

    cnt = cnt3[..., 0]                                    # (N, C) class counts
    ssq = ssq3[..., 0]                                    # (N, C) grouped sum of prob^2
    total = jnp.sum(cnt, axis=1, keepdims=True)           # valid pixels per image
    denom = jnp.maximum(jnp.power(cnt, ratio) * jnp.power(total, 1.0 - ratio), 1.0)
    w = 1.0 / denom                                       # (N, C) per-class weights
    loss = -jnp.sum(w * ssq) / (N * num_class)
    return loss


def _reference(prob, *, ignore_index=-1, num_class=None, ratio=0.2):
    """Pure-JAX transcription of IW_MaxSquareloss.forward (label=None)."""
    N, C, H, W = prob.shape
    if num_class is None:
        num_class = C
    p = prob.astype(jnp.float32)
    maxpred = jnp.max(p, axis=1)
    argpred = jnp.argmax(p, axis=1)
    mask_arg = maxpred != ignore_index
    argpred = jnp.where(mask_arg, argpred, ignore_index)
    onehot = jax.nn.one_hot(argpred, C, dtype=jnp.float32)    # -1 -> all-zero row
    hist = jnp.sum(onehot, axis=(1, 2))                       # (N, C) == histc(...)[1:]
    total = jnp.sum(hist, axis=1, keepdims=True)
    w_class = 1.0 / jnp.maximum(hist ** ratio * total ** (1.0 - ratio), 1.0)
    idx = jnp.clip(argpred, 0, C - 1).reshape(N, -1)
    weights = jnp.take_along_axis(w_class, idx, axis=1).reshape(N, H, W)
    val = jnp.sum(p * p, axis=1) * weights * mask_arg
    return -jnp.sum(val) / (N * num_class)


if __name__ == "__main__":
    key = jax.random.PRNGKey(0)
    logits = jax.random.normal(key, (2, 4, 16, 16), dtype=jnp.float32)
    prob = jax.nn.softmax(logits, axis=1)   # module expects class probabilities

    loss = iw_maxsquare_loss(prob, ignore_index=-1, num_class=4, ratio=0.2)
    loss = jax.block_until_ready(loss)

    ref = jax.block_until_ready(
        _reference(prob, ignore_index=-1, num_class=4, ratio=0.2))
    assert jnp.allclose(loss, ref, rtol=1e-5, atol=1e-5), (loss, ref)

    print("KERNEL_OK")
</pallas_src>

<mosaic_0001>
module attributes {stable_mosaic.version = 11 : i64} {
  func.func @_iw_msl_kernel(%arg0: i32, %arg1: i32, %arg2: memref<1x4x256xf32, #tpu.memory_space<vmem>>, %arg3: memref<1x4x1xf32, #tpu.memory_space<vmem>>, %arg4: memref<1x4x1xf32, #tpu.memory_space<vmem>>, %arg5: memref<4x256xf32, #tpu.memory_space<vmem>>, %arg6: memref<4x256xf32, #tpu.memory_space<vmem>>) attributes {dimension_semantics = [#tpu.dimension_semantics<parallel>, #tpu.dimension_semantics<arbitrary>], iteration_bounds = array<i64: 2, 1>, scalar_prefetch = 0 : i64, scratch_operands = 2 : i64, tpu.core_type = #tpu.core_type<tc>, window_params = [{transform_indices = @transform_0, window_bounds = array<i64: 1, 4, 256>}, {transform_indices = @transform_1, window_bounds = array<i64: 1, 4, 1>}, {transform_indices = @transform_2, window_bounds = array<i64: 1, 4, 1>}]} {
    %c0_i32 = arith.constant 0 : i32
    %0 = arith.cmpi eq, %arg1, %c0_i32 : i32
    %1 = arith.extui %0 : i1 to i32
    %c0_i32_0 = arith.constant 0 : i32
    %2 = arith.cmpi ne, %1, %c0_i32_0 : i32
    scf.if %2 {
      %cst_18 = arith.constant 0.000000e+00 : f32
      %37 = vector.broadcast %cst_18 : f32 to vector<4x256xf32>
      %c0_19 = arith.constant 0 : index
      %c0_20 = arith.constant 0 : index
      %38 = vector.load %arg5[%c0_19, %c0_20] : memref<4x256xf32, #tpu.memory_space<vmem>>, vector<4x256xf32>
      tpu.vector_store %arg5[%c0_19, %c0_20], %37 {strides = array<i32>} : memref<4x256xf32, #tpu.memory_space<vmem>>, vector<4x256xf32>,
      %cst_21 = arith.constant 0.000000e+00 : f32
      %39 = vector.broadcast %cst_21 : f32 to vector<4x256xf32>
      %c0_22 = arith.constant 0 : index
      %c0_23 = arith.constant 0 : index
      %40 = vector.load %arg6[%c0_22, %c0_23] : memref<4x256xf32, #tpu.memory_space<vmem>>, vector<4x256xf32>
      tpu.vector_store %arg6[%c0_22, %c0_23], %39 {strides = array<i32>} : memref<4x256xf32, #tpu.memory_space<vmem>>, vector<4x256xf32>,
    } else {
    }
    %c0 = arith.constant 0 : index
    %c0_1 = arith.constant 0 : index
    %c0_2 = arith.constant 0 : index
    %3 = vector.load %arg2[%c0, %c0_1, %c0_2] : memref<1x4x256xf32, #tpu.memory_space<vmem>>, vector<1x4x256xf32>
    %4 = vector.shape_cast %3 : vector<1x4x256xf32> to vector<4x256xf32>
    %cst = arith.constant dense<0xFF800000> : vector<256xf32>
    %5 = vector.multi_reduction <maximumf>, %4, %cst [0] : vector<4x256xf32> to vector<256xf32>
    %6 = vector.shape_cast %5 : vector<256xf32> to vector<1x256xf32>
    %7 = tpu.iota {dimensions = array<i32: 0>} : vector<4x256xi32>
    %8 = vector.broadcast %6 : vector<1x256xf32> to vector<4x256xf32>
    %9 = arith.cmpf oeq, %4, %8 : vector<4x256xf32>
    %c4_i32 = arith.constant 4 : i32
    %10 = vector.broadcast %c4_i32 : i32 to vector<4x256xi32>
    %11 = arith.select %9, %7, %10 : vector<4x256xi1>, vector<4x256xi32>
    %cst_3 = arith.constant dense<2147483647> : vector<256xi32>
    %12 = vector.multi_reduction <minsi>, %11, %cst_3 [0] : vector<4x256xi32> to vector<256xi32>
    %13 = vector.shape_cast %12 : vector<256xi32> to vector<1x256xi32>
    %cst_4 = arith.constant -1.000000e+00 : f32
    %14 = vector.broadcast %cst_4 : f32 to vector<1x256xf32>
    %15 = arith.cmpf one, %6, %14 : vector<1x256xf32>
    %16 = vector.broadcast %13 : vector<1x256xi32> to vector<4x256xi32>
    %17 = arith.cmpi eq, %7, %16 : vector<4x256xi32>
    %18 = vector.broadcast %15 : vector<1x256xi1> to vector<4x256xi1>
    %19 = arith.andi %17, %18 : vector<4x256xi1>
    %cst_5 = arith.constant 1.000000e+00 : f32
    %cst_6 = arith.constant 0.000000e+00 : f32
    %20 = vector.broadcast %cst_5 : f32 to vector<4x256xf32>
    %21 = vector.broadcast %cst_6 : f32 to vector<4x256xf32>
    %22 = arith.select %19, %20, %21 : vector<4x256xi1>, vector<4x256xf32>
    %23 = arith.mulf %4, %4 : vector<4x256xf32>
    %cst_7 = arith.constant dense<0.000000e+00> : vector<256xf32>
    %24 = vector.multi_reduction <add>, %23, %cst_7 [0] : vector<4x256xf32> to vector<256xf32>
    %25 = vector.shape_cast %24 : vector<256xf32> to vector<1x256xf32>
    %c0_8 = arith.constant 0 : index
    %c0_9 = arith.constant 0 : index
    %26 = vector.load %arg5[%c0_8, %c0_9] : memref<4x256xf32, #tpu.memory_space<vmem>>, vector<4x256xf32>
    %27 = arith.addf %26, %22 : vector<4x256xf32>
    %c0_10 = arith.constant 0 : index
    %c0_11 = arith.constant 0 : index
    %28 = vector.load %arg5[%c0_10, %c0_11] : memref<4x256xf32, #tpu.memory_space<vmem>>, vector<4x256xf32>
    tpu.vector_store %arg5[%c0_10, %c0_11], %27 {strides = array<i32>} : memref<4x256xf32, #tpu.memory_space<vmem>>, vector<4x256xf32>,
    %c0_12 = arith.constant 0 : index
    %c0_13 = arith.constant 0 : index
    %29 = vector.load %arg6[%c0_12, %c0_13] : memref<4x256xf32, #tpu.memory_space<vmem>>, vector<4x256xf32>
    %30 = vector.broadcast %25 : vector<1x256xf32> to vector<4x256xf32>
    %31 = arith.mulf %22, %30 : vector<4x256xf32>
    %32 = arith.addf %29, %31 : vector<4x256xf32>
    %c0_14 = arith.constant 0 : index
    %c0_15 = arith.constant 0 : index
    %33 = vector.load %arg6[%c0_14, %c0_15] : memref<4x256xf32, #tpu.memory_space<vmem>>, vector<4x256xf32>
    tpu.vector_store %arg6[%c0_14, %c0_15], %32 {strides = array<i32>} : memref<4x256xf32, #tpu.memory_space<vmem>>, vector<4x256xf32>,
    %c0_i32_16 = arith.constant 0 : i32
    %34 = arith.cmpi eq, %arg1, %c0_i32_16 : i32
    %35 = arith.extui %34 : i1 to i32
    %c0_i32_17 = arith.constant 0 : i32
    %36 = arith.cmpi ne, %35, %c0_i32_17 : i32
    scf.if %36 {
      %c0_18 = arith.constant 0 : index
      %c0_19 = arith.constant 0 : index
      %37 = vector.load %arg5[%c0_18, %c0_19] : memref<4x256xf32, #tpu.memory_space<vmem>>, vector<4x256xf32>
      %cst_20 = arith.constant dense<0.000000e+00> : vector<4xf32>
      %38 = vector.multi_reduction <add>, %37, %cst_20 [1] : vector<4x256xf32> to vector<4xf32>
      %39 = vector.shape_cast %38 : vector<4xf32> to vector<4x1xf32>
      %c0_21 = arith.constant 0 : index
      %c0_22 = arith.constant 0 : index
      %c0_23 = arith.constant 0 : index
      %40 = vector.load %arg3[%c0_21, %c0_22, %c0_23] : memref<1x4x1xf32, #tpu.memory_space<vmem>>, vector<1x4x1xf32>
      %41 = vector.shape_cast %40 : vector<1x4x1xf32> to vector<4x1xf32>
      %42 = vector.shape_cast %39 : vector<4x1xf32> to vector<1x4x1xf32>
      tpu.vector_store %arg3[%c0_21, %c0_22, %c0_23], %42 {strides = array<i32>} : memref<1x4x1xf32, #tpu.memory_space<vmem>>, vector<1x4x1xf32>,
      %c0_24 = arith.constant 0 : index
      %c0_25 = arith.constant 0 : index
      %43 = vector.load %arg6[%c0_24, %c0_25] : memref<4x256xf32, #tpu.memory_space<vmem>>, vector<4x256xf32>
      %cst_26 = arith.constant dense<0.000000e+00> : vector<4xf32>
      %44 = vector.multi_reduction <add>, %43, %cst_26 [1] : vector<4x256xf32> to vector<4xf32>
      %45 = vector.shape_cast %44 : vector<4xf32> to vector<4x1xf32>
      %c0_27 = arith.constant 0 : index
      %c0_28 = arith.constant 0 : index
      %c0_29 = arith.constant 0 : index
      %46 = vector.load %arg4[%c0_27, %c0_28, %c0_29] : memref<1x4x1xf32, #tpu.memory_space<vmem>>, vector<1x4x1xf32>
      %47 = vector.shape_cast %46 : vector<1x4x1xf32> to vector<4x1xf32>
      %48 = vector.shape_cast %45 : vector<4x1xf32> to vector<1x4x1xf32>
      tpu.vector_store %arg4[%c0_27, %c0_28, %c0_29], %48 {strides = array<i32>} : memref<1x4x1xf32, #tpu.memory_space<vmem>>, vector<1x4x1xf32>,
    } else {
    }
    return
  }
  func.func @transform_0(%arg0: i32, %arg1: i32) -> (i32, i32, i32) {
    %c0_i32 = arith.constant 0 : i32
    %c0_i32_0 = arith.constant 0 : i32
    return %arg0, %c0_i32, %arg1 : i32, i32, i32
  }
  func.func @transform_1(%arg0: i32, %arg1: i32) -> (i32, i32, i32) {
    %c0_i32 = arith.constant 0 : i32
    %c0_i32_0 = arith.constant 0 : i32
    %c0_i32_1 = arith.constant 0 : i32
    return %arg0, %c0_i32, %c0_i32_0 : i32, i32, i32
  }
  func.func @transform_2(%arg0: i32, %arg1: i32) -> (i32, i32, i32) {
    %c0_i32 = arith.constant 0 : i32
    %c0_i32_0 = arith.constant 0 : i32
    %c0_i32_1 = arith.constant 0 : i32
    return %arg0, %c0_i32, %c0_i32_0 : i32, i32, i32
  }
}

</mosaic_0001>

<bundles_post_ra>
// kernel: tpu_custom_call.1
= control target key start
LH: loop header
LB: loop body
LE: loop exit
PB: predicated region body
PF: predicated region fallthrough
CT: control target
= control target key end

     0   :  { %8 = vsyncpa [#allocation5], 0  ;;  %s738_s0 = inlined_call_operand.hbm [shape: f32[2,4,256], index: 0, kind: input, shape index: {}]   ;;  %s739_s1 = inlined_call_operand.vmem [shape: f32[2,4,1], index: 1, kind: output, shape index: {0}]   ;;  %s740_s2 = inlined_call_operand.vmem [shape: f32[2,4,1], index: 2, kind: output, shape index: {1}]  }
   0x1   :  { %10 = vsyncpa [#allocation5 + $0x1], 0  ;;  %s600_s9 = smov 0   ;;  %s602_s10 = smov 0  }
   0x2   :  { %s604_s11 = smov 0   ;;  %s606_s12 = smov 0  }
   0x3   :  { %s608_s13 = smov 0   ;;  %s610_s14 = smov 0  }
   0x4 LB: > { %s426_s15 = sadd.s32 4294967295, %s580_s14   ;;  %s28_s16 = sadd.s32 1, %s576_s13  ;;  %s580_s14 = sphi %s610_s14, %s16_s14   ;;  %s576_s13 = sphi %s608_s13, %s750_s13   ;;  %s572_s12 = sphi %s606_s12, %s749_s12   ;;  %s568_s11 = sphi %s604_s11, %s748_s11   ;;  %s564_s10 = sphi %s602_s10, %s747_s10   ;;  %s560_s9 = sphi %s600_s9, %s746_s9  }
   0x5   : > { %p30_p0 = scmp.ge.s32.totalorder %s28_s16, 2  ;;  %s37_s17 = sadd.s32 1, %s568_s11 }
   0x6   : > { %p44_p1 = scmp.ne.s32.totalorder %s568_s11, %s564_s10  ;;  %p45_p2 = scmp.eq.s32.totalorder %s580_s14, 0 }
   0x7   : > { %s752_s16 = smov (%p30_p0, %s28_s16), 0  ;;  %p50_p4 = scmp.ne.s32.totalorder %s564_s10, %s560_s9 }
   0x8   : > { %p636_p3 = por %p45_p2, %p44_p1  ;;  %s32_s19 = ssub.s32 %s576_s13, %s752_s16 }
   0x9   : > { %p51_p5 = scmp.eq.s32.totalorder %s426_s15, 0  ;;  %p35_p6 = scmp.eq.s32.totalorder %s32_s19, 0 }
   0xa   : > { %p448_p8 = scmp.lt.s32.totalorder %s580_s14, 2  ;;  %s126_s22 = sand.u32 1, %s568_s11  }
   0xb   : > { %p643_p7 = por %p51_p5, %p50_p4  ;;  %s439_s23 = sshll.u32 %s576_s13, 7 }
   0xc   : > { %s649_s21 = scalar_select %p35_p6, %s568_s11, %s37_s17  }
   0xd   : > { %s430_s24 = sshll.u32 %s126_s22, 3  ;;  %s656_s27 = scalar_lea.hbm %s738_s0, %s439_s23 }
   0xe   : > { %s130_s28 = scalar_lea.vmem [#allocation4], %s430_s24  ;;  %p660_p9 = pnand %p448_p8, %p636_p3 }
   0xf   : > { %s140_s29 = sshll.u32 %s130_s28, 4  ;;  %s127_s3 = scalar_lea.sflag [#allocation5], %s126_s22  ;;  %s664_s29 = int_to_ptr.vmem [resolvable:$true] %s140_s29 }
  0x10   : > { %s500_s4 = scalar_lea.hbm %s656_s27, 128  ;;  %p502_p13 = pneg %p660_p9 }
  0x11   : > { %p501_p12 = scmp.ne.s32.totalorder %s656_s27, %s500_s4  ;;  %s505_s7 = scalar_lea.hbm %s738_s0, 256 }
  0x12   : > { %p506_p2 = scmp.lt.u32.totalorder %s656_s27, %s738_s0  ;;  %p507_p3 = scmp.lt.u32.totalorder %s505_s7, %s500_s4 }
  0x13   : > { %p503_p0 = pnand %p502_p13, %p501_p12  ;;  %p509_p5 = scmp.lt.u32.totalorder %s500_s4, %s656_s27 }
  0x14   : > { %p508_p4 = por %p507_p3, %p506_p2 }
  0x15   : > { %p504_p1 = pneg %p503_p0 }
  0x16   : > { %p510_p6 = por %p509_p5, %p508_p4 }
  0x18   : > { %p511_p8 = pnand %p510_p6, %p504_p1 }
  0x1a   : > { %514 = shalt.err (!%p511_p8)
}
  0x1b   : > { %s515_s15 = scalar_lea.vmem %s664_s29, 128  ;;  %s582_s17 = smov [#allocation4]  }
  0x1c   : > { %p516_p12 = scmp.ne.s32.totalorder %s664_s29, %s515_s15  ;;  %s520_s18 = sshll.u32 %s582_s17, 4  ;;  %s521_s18 = int_to_ptr.vmem [resolvable:$false] %s520_s18 }
  0x1d   : > { %s522_s19 = scalar_lea.vmem %s521_s18, 256  ;;  %p523_p11 = scmp.lt.s32.totalorder %s664_s29, %s521_s18 }
  0x1e   : > { %p518_p0 = pnand %p516_p12, %p502_p13  ;;  %p524_p2 = scmp.lt.s32.totalorder %s522_s19, %s515_s15 }
  0x20   : > { %p519_p10 = pneg %p518_p0  ;;  %p525_p3 = por %p524_p2, %p523_p11 }
  0x22   : > { %p526_p4 = pnand %p525_p3, %p519_p10 }
  0x24   : > { %529 = shalt.err (!%p526_p4)
}
  0x25   : > { %447 = dma.hbm_to_vmem [thread:$0]  (!%p660_p9), %s656_s27, 128, %s664_s29, %s127_s3  }
  0x26   : > { %p744_p1 = scmp.lt.s32.totalorder %s580_s14, 3  ;;  %p745_p5 = scmp.ge.s32.totalorder %s580_s14, 1 }
  0x28   : > { %p146_p13 = pnand %p745_p5, %p744_p1 }
  0x29   : > { %s151_s22 = sand.u32 (!%p146_p13), 1, %s564_s10  }
  0x2a   : > { %149 = sbr.rel (%p146_p13) target bundleno = 240 (0xf0), region = 24  ;;  %s434_s23 = sshll.u32 (!%p146_p13), %s151_s22, 3 }
  0x2b   : > { %s152_s24 = scalar_lea.sflag (!%p146_p13), [#allocation5], %s151_s22  ;;  %s155_s25 = scalar_lea.vmem (!%p146_p13), [#allocation4], %s434_s23 }
  0x31   : > { %555 = dma.done.wait (%p643_p7), %s152_s24, 128  }
  0x32   : > { %557 = vsyncadd (%p643_p7), %s152_s24, 4294967168  ;;  %vm198_vm0 = vcmask 1043456   ;;  %v194_v0 = vld [vmem:[%s155_s25] sm:$0xff]  ;;  %v213_v5 = vlaneseq  ;;  %v583_v6 = vmov 839922192   ;;  %v584_v56 = vmov 0.0  }
  0x33   : > { %v196_v1 = vcombine.high %v194_v0, %v194_v0  ;;  %v199_v2 = vsel %vm198_vm0, %v194_v0, -inf  ;;  %v221_v7 = vunpack.c.l.s4 %v583_v6  ;;  %v261_v8 = vmul.f32 %v194_v0, %v194_v0  ;;  %p180_p7 = scmp.lt.s32.totalorder %s572_s12, 1 }
  0x34   : > { %v200_v3 = vrot.slane %v199_v2, 4  ;;  %v214_v13 = vshrl.u32 %v213_v5, 7  ;;  %vm307_vm14 = vcmask 3072  }
  0x35   : > { %v206_v4 = vsel %vm198_vm0, %v196_v1, -inf  ;;  %v222_v14 = vunpack.c.0.s8 %v221_v7  ;;  %v263_v15 = vcombine.high %v261_v8, %v261_v8  ;;  %v265_v18 = vsel %vm198_vm0, %v261_v8, 0.0  ;;  %s754_s12 = smov (!%p180_p7, %s572_s12), 1 }
  0x36   : > { %v201_v9 = vmax.f32 %v199_v2, %v200_v3  ;;  %v207_v10 = vrot.slane %v206_v4, 4  ;;  %v266_v25 = vrot.slane %v265_v18, 4  ;;  %s435_s20 = sshll.u32 %s754_s12, 2 }
  0x37   : > { %v225_v21 = vsub.s32 %v222_v14, %v214_v13  ;;  %v272_v22 = vsel %vm198_vm0, %v263_v15, 0.0  ;;  %s183_s28 = scalar_lea.vmem %s739_s1, %s435_s20  ;;  %s187_s3 = scalar_lea.vmem %s740_s2, %s435_s20 }
  0x38   : > { %v202_v11 = vrot.slane %v201_v9, 2  ;;  %v208_v12 = vmax.f32 %v206_v4, %v207_v10  ;;  %v273_v27 = vrot.slane %v272_v22, 4  ;;  %v267_v30 = vadd.f32 %v266_v25, %v265_v18 }
  0x39   : > { %v226_v28 = vrot.slane %v214_v13, %v225_v21 }
  0x3a   : > { %v203_v16 = vmax.f32 %v201_v9, %v202_v11  ;;  %v209_v17 = vrot.slane %v208_v12, 2  ;;  %v274_v31 = vadd.f32 %v273_v27, %v272_v22  ;;  %v268_v35 = vrot.slane %v267_v30, 2 }
  0x3c   : > { %v204_v19 = vrot.slane %v203_v16, 1  ;;  %v210_v20 = vmax.f32 %v208_v12, %v209_v17  ;;  %v275_v38 = vrot.slane %v274_v31, 2  ;;  %v269_v41 = vadd.f32 %v268_v35, %v267_v30 }
  0x3e   : > { %v205_v23 = vmax.f32 %v203_v16, %v204_v19  ;;  %v211_v24 = vrot.slane %v210_v20, 1  ;;  %v276_v44 = vadd.f32 %v275_v38, %v274_v31  ;;  %v270_v47 = vrot.slane %v269_v41, 1 }
  0x40   : > { %v212_v26 = vmax.f32 %v210_v20, %v211_v24  ;;  %v277_v50 = vrot.slane %v276_v44, 1  ;;  %vm249_vm7 = vcmp.ne.f32.partialorder %v205_v23, -1.0  ;;  %v271_v53 = vadd.f32 %v270_v47, %v269_v41 }
  0x42   : > { %v217_v29 = vcombine.low %v205_v23, %v212_v26  ;;  %vm250_vm9 = vcmp.ne.f32.partialorder %v212_v26, -1.0  ;;  %v278_v55 = vadd.f32 %v277_v50, %v276_v44 }
  0x44   : > { %vm219_vm1 = vcmp.eq.f32.partialorder %v194_v0, %v217_v29 }
  0x45   : > { %v227_v32 = vsel %vm219_vm1, %v226_v28, 4 }
  0x46   : > { %v228_v33 = vcombine.high %v227_v32, %v227_v32  ;;  %v229_v34 = vsel %vm198_vm0, %v227_v32, 2147483647 }
  0x47   : > { %v230_v36 = vrot.slane %v229_v34, 4 }
  0x48   : > { %v239_v37 = vsel %vm198_vm0, %v228_v33, 2147483647 }
  0x49   : > { %vm231_vm2 = vcmp.lt.s32.totalorder %v229_v34, %v230_v36  ;;  %v240_v39 = vrot.slane %v239_v37, 4 }
  0x4a   : > { %v232_v40 = vsel %vm231_vm2, %v229_v34, %v230_v36 }
  0x4b   : > { %v233_v42 = vrot.slane %v232_v40, 2  ;;  %vm241_vm3 = vcmp.lt.s32.totalorder %v239_v37, %v240_v39 }
  0x4c   : > { %v242_v43 = vsel %vm241_vm3, %v239_v37, %v240_v39 }
  0x4d   : > { %vm234_vm4 = vcmp.lt.s32.totalorder %v232_v40, %v233_v42  ;;  %v243_v45 = vrot.slane %v242_v43, 2 }
  0x4e   : > { %v235_v46 = vsel %vm234_vm4, %v232_v40, %v233_v42 }
  0x4f   : > { %v236_v48 = vrot.slane %v235_v46, 1  ;;  %vm244_vm5 = vcmp.lt.s32.totalorder %v242_v43, %v243_v45 }
  0x50   : > { %v245_v49 = vsel %vm244_vm5, %v242_v43, %v243_v45 }
  0x51   : > { %vm237_vm6 = vcmp.lt.s32.totalorder %v235_v46, %v236_v48  ;;  %v246_v51 = vrot.slane %v245_v49, 1 }
  0x52   : > { %v238_v52 = vsel %vm237_vm6, %v235_v46, %v236_v48 }
  0x53   : > { %vm247_vm8 = vcmp.lt.s32.totalorder %v245_v49, %v246_v51  ;;  %vm251_vm10 = vcmp.eq.s32.totalorder %v214_v13, %v238_v52 }
  0x54   : > { %v248_v54 = vsel %vm247_vm8, %v245_v49, %v246_v51  ;;  %vm257_vm11 = vmand %vm251_vm10, %vm249_vm7 }
  0x55   : > { %vm252_vm12 = vcmp.eq.s32.totalorder %v214_v13, %v248_v54  ;;  %v259_v57 = vsel %vm257_vm11, 1.0, %v584_v56 }
  0x56   : > { %vm258_vm13 = vmand %vm252_vm12, %vm250_vm9  ;;  %v287_v58 = vmul.f32 %v271_v53, %v259_v57 }
  0x57   : > { %v260_v59 = vsel %vm258_vm13, 1.0, %v584_v56 }
  0x58   : > { %v282_v60 = vcombine.low %v259_v57, %v260_v59  ;;  %v440_v61 = vcombine.low %v260_v59, %v260_v59  ;;  %v288_v62 = vmul.f32 %v278_v55, %v260_v59 }
  0x5a   : > { %v302_v63 = vsel %vm198_vm0, %v282_v60, 0.0  ;;  %v303_v0 = vsel %vm198_vm0, %v440_v61, 0.0  ;;  %v291_v1 = vcombine.low %v287_v58, %v288_v62  ;;  %v441_v2 = vcombine.low %v288_v62, %v288_v62 }
  0x5b   : > { %v304_v3 = vadd.f32 %v303_v0, %v302_v63 }
  0x5c   : > { %v313_v4 = vsel %vm198_vm0, %v291_v1, 0.0  ;;  %v314_v5 = vsel %vm198_vm0, %v441_v2, 0.0 }
  0x5d   : > { %305 = vadd.xlane.f32.xlu0 %v304_v3  ;;  %v315_v6 = vadd.f32 %v314_v5, %v313_v4 }
  0x61   : > { %316 = vadd.xlane.f32.xlu0 %v315_v6 }
  0xea   : > { %v306_v7 = vpop.xlane.xlu0 %305 }
  0xeb   : > { %308 = vst.msk [vmem:[%s183_s28] sm:$0xf] %vm307_vm14, %v306_v7 }
  0xee   : > { %v317_v8 = vpop.xlane.xlu0 %316 }
  0xef   : > { %318 = vst.msk [vmem:[%s187_s3] sm:$0xf] %vm307_vm14, %v317_v8 }
  0xf0 PF: > { %s16_s14 = sadd.s32 1, %s580_s14   ;;  %s746_s9 = smov %s564_s10 }
  0xf1   : > { %p13_p9 = scmp.ge.s32.totalorder %s16_s14, 4   ;;  %s747_s10 = smov %s568_s11 }
  0xf2   : > { %s748_s11 = smov %s649_s21  ;;  %s749_s12 = smov %s576_s13 }
  0xf3   : > { %s750_s13 = smov %s752_s16  ;;  %15 = sbr.rel (!%p13_p9) target bundleno = 4 (0x4), region = 84 }
  0xfa   :  { %352 = vsyncpa [#allocation5], 1 }
  0xfb   :  { %354 = vsyncpa [#allocation5 + $0x1], 1 }

</bundles_post_ra>
